<compile_context>
chip_gen: v5e
topology: v5e:2x2
jax: 0.10.0
libtpu: 0.0.40
codegen_flags: <defaults>
</compile_context>

<pallas_src>
import numpy as np
import jax
import jax.numpy as jnp
from jax.experimental import pallas as pl
from jax.experimental.pallas import tpu as pltpu


def _round_up(n, m):
    return ((n + m - 1) // m) * m


def actor_kernel(x_ref, w1_ref, b1_ref, w2_ref, b2_ref, w3_ref, b3_ref, o_ref):
    # fc1 + ReLU   (bf16 inputs, f32 accumulation on the MXU)
    h1 = jnp.dot(x_ref[...], w1_ref[...], preferred_element_type=jnp.float32)
    h1 = jnp.maximum(h1 + b1_ref[...], 0.0)
    # fc2 + ReLU
    h2 = jnp.dot(h1.astype(w2_ref.dtype), w2_ref[...],
                 preferred_element_type=jnp.float32)
    h2 = jnp.maximum(h2 + b2_ref[...], 0.0)
    # fc3 + tanh  (tanh goes to the EUP -> free slot relative to MXU/VPU)
    h3 = jnp.dot(h2.astype(w3_ref.dtype), w3_ref[...],
                 preferred_element_type=jnp.float32)
    o_ref[...] = jnp.tanh(h3 + b3_ref[...]).astype(o_ref.dtype)


def actor_forward(x, padded_params, *, block_batch=512):
    """x: (B, state_size) float32. padded_params: output of pad_actor_params."""
    w1, b1, w2, b2, w3, b3 = (padded_params["w1"], padded_params["b1"],
                              padded_params["w2"], padded_params["b2"],
                              padded_params["w3"], padded_params["b3"])
    A = padded_params["action_size"]          # true (unpadded) action width
    B, S = x.shape
    Ap = w3.shape[1]                          # padded (lane-dense) action width
    compute_dtype = w1.dtype

    # Batch tile: multiple of 8 (f32/bf16 sublane), as large as practical.
    TB = min(block_batch, _round_up(max(B, 8), 8))
    B_pad = _round_up(B, TB)

    xp = x.astype(compute_dtype)
    if B_pad != B:
        xp = jnp.pad(xp, ((0, B_pad - B), (0, 0)))

    grid = (pl.cdiv(B_pad, TB),)

    def resident_spec(shape):
        # Constant index_map -> DMA'd once, stays resident in VMEM across steps.
        return pl.BlockSpec(shape, lambda i: (0,) * len(shape))

    out = pl.pallas_call(
        actor_kernel,
        out_shape=jax.ShapeDtypeStruct((B_pad, Ap), jnp.float32),
        grid=grid,
        in_specs=[
            pl.BlockSpec((TB, S), lambda i: (i, 0)),      # x streams with grid
            resident_spec(w1.shape), resident_spec(b1.shape),
            resident_spec(w2.shape), resident_spec(b2.shape),
            resident_spec(w3.shape), resident_spec(b3.shape),
        ],
        out_specs=pl.BlockSpec((TB, Ap), lambda i: (i, 0)),  # lane-dense store
        compiler_params=pltpu.CompilerParams(
            dimension_semantics=("parallel",),
        ),
    )(xp, w1, b1, w2, b2, w3, b3)
    return out[:B, :A]


def init_actor_params(key, state_size, action_size, fc1_units=350, fc2_units=280):
    """Deterministic f32 init mirroring the PyTorch module's reset_parameters.

    Note: the reference `hidden_init` uses weight.size()[0] (== out_features)
    as fan_in -- we reproduce that limit choice for fidelity.
    """
    k1, k2, k3, kb1, kb2, kb3 = jax.random.split(key, 6)
    lim1 = 1.0 / np.sqrt(fc1_units)   # hidden_init(fc1): size()[0] = out_features
    lim2 = 1.0 / np.sqrt(fc2_units)
    lim3 = 0.01
    # Weights stored as (in, out) for the kernel.
    w1 = jax.random.uniform(k1, (state_size, fc1_units), jnp.float32, -lim1, lim1)
    w2 = jax.random.uniform(k2, (fc1_units, fc2_units), jnp.float32, -lim2, lim2)
    w3 = jax.random.uniform(k3, (fc2_units, action_size), jnp.float32, -lim3, lim3)
    # Biases keep PyTorch Linear default init: U(-1/sqrt(in_features), +).
    bl1 = 1.0 / np.sqrt(state_size)
    bl2 = 1.0 / np.sqrt(fc1_units)
    bl3 = 1.0 / np.sqrt(fc2_units)
    b1 = jax.random.uniform(kb1, (1, fc1_units), jnp.float32, -bl1, bl1)
    b2 = jax.random.uniform(kb2, (1, fc2_units), jnp.float32, -bl2, bl2)
    b3 = jax.random.uniform(kb3, (1, action_size), jnp.float32, -bl3, bl3)
    return {"w1": w1, "b1": b1, "w2": w2, "b2": b2, "w3": w3, "b3": b3}


def pad_actor_params(params, compute_dtype=jnp.bfloat16):
    """Zero-pad hidden AND output widths to multiples of 128; cast weights to bf16.

    Exact w.r.t. the unpadded f32 forward up to bf16 rounding: padded columns
    get 0 weight + 0 bias -> ReLU(0)=0 (or tanh(0)=0), and the padded hidden
    columns hit 0 rows of the next weight, so they contribute nothing.  The
    padded output columns are sliced off in the wrapper.
    """
    w1, b1, w2, b2, w3, b3 = (params["w1"], params["b1"], params["w2"],
                              params["b2"], params["w3"], params["b3"])
    S, H1 = w1.shape
    H2 = w2.shape[1]
    A = w3.shape[1]
    H1p = _round_up(H1, 128)
    H2p = _round_up(H2, 128)
    Ap = _round_up(A, 128)

    w1p = jnp.zeros((S, H1p), compute_dtype).at[:, :H1].set(w1.astype(compute_dtype))
    b1p = jnp.zeros((1, H1p), jnp.float32).at[:, :H1].set(b1)
    w2p = jnp.zeros((H1p, H2p), compute_dtype).at[:H1, :H2].set(w2.astype(compute_dtype))
    b2p = jnp.zeros((1, H2p), jnp.float32).at[:, :H2].set(b2)
    w3p = jnp.zeros((H2p, Ap), compute_dtype).at[:H2, :A].set(w3.astype(compute_dtype))
    b3p = jnp.zeros((1, Ap), jnp.float32).at[:, :A].set(b3.astype(jnp.float32))
    return {"w1": w1p, "b1": b1p, "w2": w2p, "b2": b2p, "w3": w3p, "b3": b3p,
            "action_size": A}


def actor_reference(x, params):
    """Pure-JAX f32 reference matching the PyTorch forward."""
    h = jax.nn.relu(x @ params["w1"] + params["b1"])
    h = jax.nn.relu(h @ params["w2"] + params["b2"])
    return jnp.tanh(h @ params["w3"] + params["b3"])


if __name__ == "__main__":
    key = jax.random.PRNGKey(0)
    kp, kx, kx2 = jax.random.split(key, 3)

    batch = 2
    state_size = 16
    action_size = 4

    params = init_actor_params(kp, state_size, action_size,
                               fc1_units=350, fc2_units=280)
    padded = pad_actor_params(params, compute_dtype=jnp.bfloat16)

    # Small deployment-style batch (padded internally to one 8-row tile).
    x = jax.random.normal(kx, (batch, state_size), jnp.float32)
    out = jax.block_until_ready(actor_forward(x, padded))
    ref = actor_reference(x, params)
    np.testing.assert_allclose(np.asarray(out), np.asarray(ref),
                               rtol=2e-2, atol=1e-2)
    assert out.shape == (batch, action_size)

    # Larger batch exercising multiple grid steps (weights stay VMEM-resident).
    x2 = jax.random.normal(kx2, (64, state_size), jnp.float32)
    out2 = jax.block_until_ready(actor_forward(x2, padded, block_batch=16))
    ref2 = actor_reference(x2, params)
    np.testing.assert_allclose(np.asarray(out2), np.asarray(ref2),
                               rtol=2e-2, atol=1e-2)
    assert out2.shape == (64, action_size)

    print("KERNEL_OK")
</pallas_src>

<mosaic_0001>
module attributes {stable_mosaic.version = 11 : i64} {
  func.func @actor_kernel(%arg0: i32, %arg1: memref<8x16xbf16, #tpu.memory_space<vmem>>, %arg2: memref<16x384xbf16, #tpu.memory_space<vmem>>, %arg3: memref<1x384xf32, #tpu.memory_space<vmem>>, %arg4: memref<384x384xbf16, #tpu.memory_space<vmem>>, %arg5: memref<1x384xf32, #tpu.memory_space<vmem>>, %arg6: memref<384x128xbf16, #tpu.memory_space<vmem>>, %arg7: memref<1x128xf32, #tpu.memory_space<vmem>>, %arg8: memref<8x128xf32, #tpu.memory_space<vmem>>) attributes {dimension_semantics = [#tpu.dimension_semantics<parallel>], iteration_bounds = array<i64: 1>, scalar_prefetch = 0 : i64, scratch_operands = 0 : i64, tpu.core_type = #tpu.core_type<tc>, window_params = [{transform_indices = @transform_0, window_bounds = array<i64: 8, 16>}, {pipeline_mode = #tpu.pipeline_mode<synchronous>, transform_indices = @transform_1, window_bounds = array<i64: 16, 384>}, {pipeline_mode = #tpu.pipeline_mode<synchronous>, transform_indices = @transform_2, window_bounds = array<i64: 1, 384>}, {pipeline_mode = #tpu.pipeline_mode<synchronous>, transform_indices = @transform_3, window_bounds = array<i64: 384, 384>}, {pipeline_mode = #tpu.pipeline_mode<synchronous>, transform_indices = @transform_4, window_bounds = array<i64: 1, 384>}, {pipeline_mode = #tpu.pipeline_mode<synchronous>, transform_indices = @transform_5, window_bounds = array<i64: 384, 128>}, {pipeline_mode = #tpu.pipeline_mode<synchronous>, transform_indices = @transform_6, window_bounds = array<i64: 1, 128>}, {transform_indices = @transform_7, window_bounds = array<i64: 8, 128>}]} {
    %c0 = arith.constant 0 : index
    %c0_0 = arith.constant 0 : index
    %0 = vector.load %arg1[%c0, %c0_0] : memref<8x16xbf16, #tpu.memory_space<vmem>>, vector<8x16xbf16>
    %c0_1 = arith.constant 0 : index
    %c0_2 = arith.constant 0 : index
    %1 = vector.load %arg2[%c0_1, %c0_2] : memref<16x384xbf16, #tpu.memory_space<vmem>>, vector<16x384xbf16>
    %cst = arith.constant dense<0.000000e+00> : vector<8x384xf32>
    %2 = tpu.matmul %0, %1, %cst {dimension_numbers = #tpu.dot_dimension_numbers<[1], [0], [0], [1], [0, 0, 1, 1], [], []>} : vector<8x16xbf16>, vector<16x384xbf16>, vector<8x384xf32> -> vector<8x384xf32>
    %c0_3 = arith.constant 0 : index
    %c0_4 = arith.constant 0 : index
    %3 = vector.load %arg3[%c0_3, %c0_4] : memref<1x384xf32, #tpu.memory_space<vmem>>, vector<1x384xf32>
    %4 = vector.broadcast %3 : vector<1x384xf32> to vector<8x384xf32>
    %5 = arith.addf %2, %4 : vector<8x384xf32>
    %cst_5 = arith.constant 0.000000e+00 : f32
    %6 = vector.broadcast %cst_5 : f32 to vector<8x384xf32>
    %7 = arith.maximumf %5, %6 : vector<8x384xf32>
    %8 = arith.truncf %7 : vector<8x384xf32> to vector<8x384xbf16>
    %c0_6 = arith.constant 0 : index
    %c0_7 = arith.constant 0 : index
    %9 = vector.load %arg4[%c0_6, %c0_7] : memref<384x384xbf16, #tpu.memory_space<vmem>>, vector<384x384xbf16>
    %cst_8 = arith.constant dense<0.000000e+00> : vector<8x384xf32>
    %10 = tpu.matmul %8, %9, %cst_8 {dimension_numbers = #tpu.dot_dimension_numbers<[1], [0], [0], [1], [0, 0, 1, 1], [], []>} : vector<8x384xbf16>, vector<384x384xbf16>, vector<8x384xf32> -> vector<8x384xf32>
    %c0_9 = arith.constant 0 : index
    %c0_10 = arith.constant 0 : index
    %11 = vector.load %arg5[%c0_9, %c0_10] : memref<1x384xf32, #tpu.memory_space<vmem>>, vector<1x384xf32>
    %12 = vector.broadcast %11 : vector<1x384xf32> to vector<8x384xf32>
    %13 = arith.addf %10, %12 : vector<8x384xf32>
    %cst_11 = arith.constant 0.000000e+00 : f32
    %14 = vector.broadcast %cst_11 : f32 to vector<8x384xf32>
    %15 = arith.maximumf %13, %14 : vector<8x384xf32>
    %16 = arith.truncf %15 : vector<8x384xf32> to vector<8x384xbf16>
    %c0_12 = arith.constant 0 : index
    %c0_13 = arith.constant 0 : index
    %17 = vector.load %arg6[%c0_12, %c0_13] : memref<384x128xbf16, #tpu.memory_space<vmem>>, vector<384x128xbf16>
    %cst_14 = arith.constant dense<0.000000e+00> : vector<8x128xf32>
    %18 = tpu.matmul %16, %17, %cst_14 {dimension_numbers = #tpu.dot_dimension_numbers<[1], [0], [0], [1], [0, 0, 1, 1], [], []>} : vector<8x384xbf16>, vector<384x128xbf16>, vector<8x128xf32> -> vector<8x128xf32>
    %c0_15 = arith.constant 0 : index
    %c0_16 = arith.constant 0 : index
    %19 = vector.load %arg7[%c0_15, %c0_16] : memref<1x128xf32, #tpu.memory_space<vmem>>, vector<1x128xf32>
    %20 = vector.broadcast %19 : vector<1x128xf32> to vector<8x128xf32>
    %21 = arith.addf %18, %20 : vector<8x128xf32>
    %22 = math.tanh %21 : vector<8x128xf32>
    %c0_17 = arith.constant 0 : index
    %c0_18 = arith.constant 0 : index
    %23 = vector.load %arg8[%c0_17, %c0_18] : memref<8x128xf32, #tpu.memory_space<vmem>>, vector<8x128xf32>
    tpu.vector_store %arg8[%c0_17, %c0_18], %22 {strides = array<i32>} : memref<8x128xf32, #tpu.memory_space<vmem>>, vector<8x128xf32>,
    return
  }
  func.func @transform_0(%arg0: i32) -> (i32, i32) {
    %c0_i32 = arith.constant 0 : i32
    %c0_i32_0 = arith.constant 0 : i32
    return %arg0, %c0_i32 : i32, i32
  }
  func.func @transform_1(%arg0: i32) -> (i32, i32) {
    %c0_i32 = arith.constant 0 : i32
    %c0_i32_0 = arith.constant 0 : i32
    %c0_i32_1 = arith.constant 0 : i32
    return %c0_i32, %c0_i32_0 : i32, i32
  }
  func.func @transform_2(%arg0: i32) -> (i32, i32) {
    %c0_i32 = arith.constant 0 : i32
    %c0_i32_0 = arith.constant 0 : i32
    %c0_i32_1 = arith.constant 0 : i32
    return %c0_i32, %c0_i32_0 : i32, i32
  }
  func.func @transform_3(%arg0: i32) -> (i32, i32) {
    %c0_i32 = arith.constant 0 : i32
    %c0_i32_0 = arith.constant 0 : i32
    %c0_i32_1 = arith.constant 0 : i32
    return %c0_i32, %c0_i32_0 : i32, i32
  }
  func.func @transform_4(%arg0: i32) -> (i32, i32) {
    %c0_i32 = arith.constant 0 : i32
    %c0_i32_0 = arith.constant 0 : i32
    %c0_i32_1 = arith.constant 0 : i32
    return %c0_i32, %c0_i32_0 : i32, i32
  }
  func.func @transform_5(%arg0: i32) -> (i32, i32) {
    %c0_i32 = arith.constant 0 : i32
    %c0_i32_0 = arith.constant 0 : i32
    %c0_i32_1 = arith.constant 0 : i32
    return %c0_i32, %c0_i32_0 : i32, i32
  }
  func.func @transform_6(%arg0: i32) -> (i32, i32) {
    %c0_i32 = arith.constant 0 : i32
    %c0_i32_0 = arith.constant 0 : i32
    %c0_i32_1 = arith.constant 0 : i32
    return %c0_i32, %c0_i32_0 : i32, i32
  }
  func.func @transform_7(%arg0: i32) -> (i32, i32) {
    %c0_i32 = arith.constant 0 : i32
    %c0_i32_0 = arith.constant 0 : i32
    return %arg0, %c0_i32 : i32, i32
  }
}

</mosaic_0001>

<bundles_post_ra>
// kernel: tpu_custom_call.1
= control target key start
LH: loop header
LB: loop body
LE: loop exit
PB: predicated region body
PF: predicated region fallthrough
CT: control target
= control target key end

     0   :  { %12 = vsyncpa [#allocation3], 0  ;;  %s1787_s0 = inlined_call_operand.hbm [shape: bf16[8,16], index: 0, kind: input, shape index: {}]   ;;  %s1788_s1 = inlined_call_operand.hbm [shape: bf16[16,384], index: 1, kind: input, shape index: {}]   ;;  %s1789_s2 = inlined_call_operand.hbm [shape: f32[1,384], index: 2, kind: input, shape index: {}]   ;;  %s1790_s3 = inlined_call_operand.hbm [shape: bf16[384,384], index: 3, kind: input, shape index: {}]   ;;  %s1791_s4 = inlined_call_operand.vmem [shape: f32[1,384], index: 4, kind: input, shape index: {}]   ;;  %s1792_s5 = inlined_call_operand.hbm [shape: bf16[384,128], index: 5, kind: input, shape index: {}]   ;;  %s1793_s6 = inlined_call_operand.vmem [shape: f32[1,128], index: 6, kind: input, shape index: {}]   ;;  %s1794_s7 = inlined_call_operand.hbm [shape: f32[8,128], index: 7, kind: output, shape index: {}]  }
   0x1   :  { %13 = vsyncpa [#allocation6], 0 }
   0x2   :  { %14 = vsyncpa [#allocation9], 0  ;;  %s31_s26 = sshll.u32 %s1788_s1, 4  ;;  %s32_s26 = int_to_ptr.hbm [resolvable:$true] %s31_s26 }
   0x3   :  { %15 = vsyncpa [#allocation4], 0  ;;  %s1710_s27 = smov [#allocation5]   ;;  %s55_s8 = sshll.u32 %s1790_s3, 4  ;;  %s56_s8 = int_to_ptr.hbm [resolvable:$true] %s55_s8 }
   0x4   :  { %s33_s28 = sshll.u32 %s1710_s27, 4  ;;  %s1711_s9 = smov 192   ;;  %s34_s28 = int_to_ptr.vmem [resolvable:$true] %s33_s28 }
   0x5   :  { %s1712_s10 = smov 12   ;;  %s1713_s11 = smov [#allocation8]  }
   0x6   :  { %39 = dma.hbm_to_vmem [thread:$0]  %s32_s26, 384, %s34_s28, [#allocation6], %s1711_s9, %s1711_s9, %s1712_s10  }
   0x7   :  { %s57_s12 = sshll.u32 %s1713_s11, 4  ;;  %s21_s15 = sshll.u32 %s1787_s0, 4  ;;  %s58_s12 = int_to_ptr.vmem [resolvable:$true] %s57_s12  ;;  %s22_s15 = int_to_ptr.hbm [resolvable:$true] %s21_s15 }
   0x8   :  { %63 = dma.hbm_to_vmem [thread:$0]  %s56_s8, 9216, %s58_s12, [#allocation9], %s1711_s9, %s1711_s9, %s1712_s10  }
   0x9   :  { %s45_s17 = sshll.u32 %s1789_s2, 4  ;;  %s1714_s18 = smov [#allocation2]   ;;  %s46_s17 = int_to_ptr.hbm [resolvable:$true] %s45_s17 }
   0xa   :  { %s23_s19 = sshll.u32 %s1714_s18, 4  ;;  %s1715_s3 = smov [#allocation7]   ;;  %s24_s19 = int_to_ptr.vmem [resolvable:$true] %s23_s19 }
   0xb   :  { %26 = dma.hbm_to_vmem [thread:$0]  %s22_s15, 64, %s24_s19, [#allocation3]  }
   0xc   :  { %s47_s20 = sshll.u32 %s1715_s3, 4  ;;  %s70_s23 = sshll.u32 %s1792_s5, 4  ;;  %s48_s20 = int_to_ptr.vmem [resolvable:$true] %s47_s20  ;;  %s71_s23 = int_to_ptr.hbm [resolvable:$true] %s70_s23 }
   0xd   :  { %50 = dma.hbm_to_vmem [thread:$0]  %s46_s17, 48, %s48_s20, [#allocation6]  }
   0xe   :  { %s1716_s0 = smov [#allocation10]   ;;  %s1717_s25 = smov 64  }
   0xf   :  { %s72_s24 = sshll.u32 %s1716_s0, 4  ;;  %s1718_s26 = smov 4   ;;  %s73_s24 = int_to_ptr.vmem [resolvable:$true] %s72_s24 }
  0x10   :  { %78 = dma.hbm_to_vmem [thread:$0]  %s71_s23, 3072, %s73_s24, [#allocation9], %s1717_s25, %s1717_s25, %s1718_s26  }
  0x11   :  { %1702 = dma.done.wait [#allocation3], 64  }
  0x12   :  { %1703 = vsyncadd [#allocation3], 4294967232 }
  0x13   :  { %1704 = dma.done.wait [#allocation6], 432  }
  0x14   :  { %1705 = vsyncadd [#allocation6], 4294966864 }
  0x15   :  { %1706 = dma.done.wait [#allocation9], 12288  }
  0x16   :  { %1707 = vsyncadd [#allocation9], 4294955008  ;;  %v1049_v0 = vld [vmem:[#allocation5] sm:$0xf]  ;;  %v1447_v1 = vld [vmem:[#allocation5 + $0x8] sm:$0xf0] }
  0x17   :  { %v1446_v2 = vld [vmem:[#allocation5 + $0x4] sm:$0xf]  ;;  %v1050_v3 = vor.u32 %v1447_v1, %v1049_v0  ;;  %v1051_v4 = vld [vmem:[#allocation5 + $0xc] sm:$0xf0]  ;;  %v1057_v5 = vld [vmem:[#allocation5 + $0x8] sm:$0xf] }
  0x18   :  { %v1448_v6 = vld [vmem:[#allocation5 + $0x10] sm:$0xf0]  ;;  %v1054_v7 = vor.u32 %v1446_v2, %v1051_v4  ;;  %vm131_vm0 = vcmask 130048   ;;  %v1148_v9 = vld [vmem:[#allocation8 + $0xa8] sm:$0xf]  ;;  %s1719_s28 = smov [#allocation11]  }
  0x19   :  { %v1058_v8 = vor.u32 %v1448_v6, %v1057_v5  ;;  %v1471_v10 = vld [vmem:[#allocation8 + $0xb0] sm:$0xf0]  ;;  %142 = vmatpush.bf16.msra.mxu0 %v1050_v3  ;;  %v102_v11 = vld [vmem:[#allocation2] sm:$0xf]  ;;  %v1136_v13 = vld [vmem:[#allocation8 + $0x90] sm:$0xf] }
  0x1a   :  { %v1149_v12 = vor.u32 %v1471_v10, %v1148_v9  ;;  %v1468_v14 = vld [vmem:[#allocation8 + $0x98] sm:$0xf0]  ;;  %155 = vmatpush.bf16.msra.mxu1 %v1054_v7  ;;  %v1244_v16 = vld [vmem:[#allocation8 + $0x168] sm:$0xf]  ;;  %v1495_v17 = vld [vmem:[#allocation8 + $0x170] sm:$0xf0] }
  0x1b   :  { %168 = vmatpush.bf16.msra.mxu2 %v1058_v8  ;;  %v1137_v15 = vor.u32 %v1468_v14, %v1136_v13  ;;  %v1470_v18 = vld [vmem:[#allocation8 + $0xac] sm:$0xf]  ;;  %v1124_v19 = vld [vmem:[#allocation8 + $0x78] sm:$0xf]  ;;  %v1465_v20 = vld [vmem:[#allocation8 + $0x80] sm:$0xf0]  ;;  %v1245_v21 = vor.u32 %v1495_v17, %v1244_v16 }
  0x1c   :  { %668 = vmatpush.bf16.msra.mxu3 %v1149_v12  ;;  %1059 = vmatmul.msk.bf16.vlgmr.msra.gmra.mxu0 %vm131_vm0, %v102_v11  ;;  %v1150_v22 = vld [vmem:[#allocation8 + $0xb4] sm:$0xf0]  ;;  %v1232_v24 = vld [vmem:[#allocation8 + $0x150] sm:$0xf]  ;;  %v1492_v25 = vld [vmem:[#allocation8 + $0x158] sm:$0xf0]  ;;  %v1125_v31 = vor.u32 %v1465_v20, %v1124_v19 }
  0x1d   :  { %1060 = vmatmul.msk.bf16.vlgmr.msra.gmra.mxu1 %vm131_vm0, %v102_v11  ;;  %v1153_v23 = vor.u32 %v1470_v18, %v1150_v22  ;;  %v1467_v26 = vld [vmem:[#allocation8 + $0x94] sm:$0xf]  ;;  %681 = vmatpush.bf16.msrb.mxu0 %v1245_v21  ;;  %v1233_v27 = vor.u32 %v1492_v25, %v1232_v24  ;;  %v1138_v28 = vld [vmem:[#allocation8 + $0x9c] sm:$0xf0]  ;;  %v1340_v29 = vld [vmem:[#allocation8 + $0x228] sm:$0xf] }
  0x1e   :  { %1061 = vmatmul.msk.bf16.vlgmr.msra.gmra.mxu2 %vm131_vm0, %v102_v11  ;;  %v1519_v30 = vld [vmem:[#allocation8 + $0x230] sm:$0xf0]  ;;  %v1112_v32 = vld [vmem:[#allocation8 + $0x60] sm:$0xf]  ;;  %v1462_v33 = vld [vmem:[#allocation8 + $0x68] sm:$0xf0]  ;;  %v1141_v34 = vor.u32 %v1467_v26, %v1138_v28 }
  0x1f   :  { %707 = vmatpush.bf16.msrb.mxu2 %v1153_v23  ;;  %v1341_v35 = vor.u32 %v1519_v30, %v1340_v29  ;;  %v1220_v36 = vld [vmem:[#allocation8 + $0x138] sm:$0xf]  ;;  %v1489_v37 = vld [vmem:[#allocation8 + $0x140] sm:$0xf0]  ;;  %v1464_v38 = vld [vmem:[#allocation8 + $0x7c] sm:$0xf]  ;;  %v1113_v46 = vor.u32 %v1462_v33, %v1112_v32 }
  0x20   :  { %669 = vmatpush.bf16.msra.mxu3 %v1137_v15  ;;  %v1126_v39 = vld [vmem:[#allocation8 + $0x84] sm:$0xf0]  ;;  %v1328_v40 = vld [vmem:[#allocation8 + $0x210] sm:$0xf]  ;;  %v1516_v41 = vld [vmem:[#allocation8 + $0x218] sm:$0xf0]  ;;  %v1221_v44 = vor.u32 %v1489_v37, %v1220_v36 }
  0x21   :  { %694 = vmatpush.bf16.msrb.mxu1 %v1341_v35  ;;  %v1100_v42 = vld [vmem:[#allocation8 + $0x48] sm:$0xf]  ;;  %v1459_v43 = vld [vmem:[#allocation8 + $0x50] sm:$0xf0]  ;;  %682 = vmatpush.bf16.msrb.mxu0 %v1233_v27  ;;  %v1329_v45 = vor.u32 %v1516_v41, %v1328_v40  ;;  %v1129_v47 = vor.u32 %v1464_v38, %v1126_v39  ;;  %v1208_v48 = vld [vmem:[#allocation8 + $0x120] sm:$0xf] }
  0x22   :  { %v1486_v49 = vld [vmem:[#allocation8 + $0x128] sm:$0xf0]  ;;  %v1316_v50 = vld [vmem:[#allocation8 + $0x1f8] sm:$0xf]  ;;  %v1461_v51 = vld [vmem:[#allocation8 + $0x64] sm:$0xf]  ;;  %v1101_v58 = vor.u32 %v1459_v43, %v1100_v42 }
  0x23   :  { %708 = vmatpush.bf16.msrb.mxu2 %v1141_v34  ;;  %v1114_v52 = vld [vmem:[#allocation8 + $0x6c] sm:$0xf0]  ;;  %v1513_v53 = vld [vmem:[#allocation8 + $0x200] sm:$0xf0]  ;;  %v1209_v56 = vor.u32 %v1486_v49, %v1208_v48  ;;  %v1196_v57 = vld [vmem:[#allocation8 + $0x108] sm:$0xf] }
  0x24   :  { %670 = vmatpush.bf16.msra.mxu3 %v1125_v31  ;;  %v1317_v54 = vor.u32 %v1513_v53, %v1316_v50  ;;  %v1088_v55 = vld [vmem:[#allocation8 + $0x30] sm:$0xf]  ;;  %v1117_v59 = vor.u32 %v1461_v51, %v1114_v52  ;;  %v1483_v60 = vld [vmem:[#allocation8 + $0x110] sm:$0xf0]  ;;  %v1304_v61 = vld [vmem:[#allocation8 + $0x1e0] sm:$0xf] }
  0x25   :  { %695 = vmatpush.bf16.msrb.mxu1 %v1329_v45  ;;  %683 = vmatpush.bf16.msrb.mxu0 %v1221_v44  ;;  %v1510_v62 = vld [vmem:[#allocation8 + $0x1e8] sm:$0xf0]  ;;  %v1456_v63 = vld [vmem:[#allocation8 + $0x38] sm:$0xf0]  ;;  %v1102_v1 = vld [vmem:[#allocation8 + $0x54] sm:$0xf0]  ;;  %v1197_v3 = vor.u32 %v1483_v60, %v1196_v57 }
  0x26   :  { %v1458_v0 = vld [vmem:[#allocation8 + $0x4c] sm:$0xf]  ;;  %v1305_v2 = vor.u32 %v1510_v62, %v1304_v61  ;;  %v1292_v4 = vld [vmem:[#allocation8 + $0x1c8] sm:$0xf]  ;;  %v1507_v5 = vld [vmem:[#allocation8 + $0x1d0] sm:$0xf0]  ;;  %v1089_v6 = vor.u32 %v1456_v63, %v1088_v55 }
  0x27   :  { %709 = vmatpush.bf16.msrb.mxu2 %v1129_v47  ;;  %v1076_v7 = vld [vmem:[#allocation8 + $0x18] sm:$0xf]  ;;  %v1105_v8 = vor.u32 %v1458_v0, %v1102_v1  ;;  %v1184_v9 = vld [vmem:[#allocation8 + $0xf0] sm:$0xf]  ;;  %v1480_v10 = vld [vmem:[#allocation8 + $0xf8] sm:$0xf0]  ;;  %v1293_v14 = vor.u32 %v1507_v5, %v1292_v4 }
  0x28   :  { %671 = vmatpush.bf16.msra.mxu3 %v1113_v46  ;;  %v1453_v11 = vld [vmem:[#allocation8 + $0x20] sm:$0xf0]  ;;  %v1455_v12 = vld [vmem:[#allocation8 + $0x34] sm:$0xf]  ;;  %v1090_v13 = vld [vmem:[#allocation8 + $0x3c] sm:$0xf0]  ;;  %v1185_v15 = vor.u32 %v1480_v10, %v1184_v9 }
  0x29   :  { %696 = vmatpush.bf16.msrb.mxu1 %v1317_v54  ;;  %684 = vmatpush.bf16.msrb.mxu0 %v1209_v56  ;;  %v1280_v16 = vld [vmem:[#allocation8 + $0x1b0] sm:$0xf]  ;;  %v1504_v17 = vld [vmem:[#allocation8 + $0x1b8] sm:$0xf0]  ;;  %v1077_v18 = vor.u32 %v1453_v11, %v1076_v7  ;;  %v1064_v19 = vld [vmem:[#allocation8] sm:$0xf]  ;;  %v1093_v20 = vor.u32 %v1455_v12, %v1090_v13 }
  0x2a   :  { %v1172_v21 = vld [vmem:[#allocation8 + $0xd8] sm:$0xf]  ;;  %v1477_v22 = vld [vmem:[#allocation8 + $0xe0] sm:$0xf0]  ;;  %v1450_v23 = vld [vmem:[#allocation8 + $0x8] sm:$0xf0]  ;;  %v1281_v28 = vor.u32 %v1504_v17, %v1280_v16 }
  0x2b   :  { %710 = vmatpush.bf16.msrb.mxu2 %v1117_v59  ;;  %v1452_v24 = vld [vmem:[#allocation8 + $0x1c] sm:$0xf]  ;;  %v1078_v25 = vld [vmem:[#allocation8 + $0x24] sm:$0xf0]  ;;  %v1494_v26 = vld [vmem:[#allocation8 + $0x16c] sm:$0xf]  ;;  %v1173_v29 = vor.u32 %v1477_v22, %v1172_v21  ;;  %v1065_v32 = vor.u32 %v1450_v23, %v1064_v19 }
  0x2c   :  { %672 = vmatpush.bf16.msra.mxu3 %v1101_v58  ;;  %v1246_v27 = vld [vmem:[#allocation8 + $0x174] sm:$0xf0]  ;;  %v1501_v31 = vld [vmem:[#allocation8 + $0x1a0] sm:$0xf0]  ;;  %v1491_v33 = vld [vmem:[#allocation8 + $0x154] sm:$0xf]  ;;  %v1081_v35 = vor.u32 %v1452_v24, %v1078_v25 }
  0x2d   :  { %697 = vmatpush.bf16.msrb.mxu1 %v1305_v2  ;;  %685 = vmatpush.bf16.msrb.mxu0 %v1197_v3  ;;  %v1268_v30 = vld [vmem:[#allocation8 + $0x198] sm:$0xf]  ;;  %v1234_v34 = vld [vmem:[#allocation8 + $0x15c] sm:$0xf0]  ;;  %v1474_v37 = vld [vmem:[#allocation8 + $0xc8] sm:$0xf0]  ;;  %v1249_v39 = vor.u32 %v1494_v26, %v1246_v27 }
  0x2e   :  { %v1160_v36 = vld [vmem:[#allocation8 + $0xc0] sm:$0xf]  ;;  %v1449_v38 = vld [vmem:[#allocation8 + $0x4] sm:$0xf]  ;;  %v1066_v40 = vld [vmem:[#allocation8 + $0xc] sm:$0xf0]  ;;  %v1269_v45 = vor.u32 %v1501_v31, %v1268_v30  ;;  %v1237_v53 = vor.u32 %v1491_v33, %v1234_v34 }
  0x2f   :  { %711 = vmatpush.bf16.msrb.mxu2 %v1105_v8  ;;  %v1518_v41 = vld [vmem:[#allocation8 + $0x22c] sm:$0xf]  ;;  %v1342_v42 = vld [vmem:[#allocation8 + $0x234] sm:$0xf0]  ;;  %v1252_v43 = vld [vmem:[#allocation8 + $0x170] sm:$0xf]  ;;  %v1161_v46 = vor.u32 %v1474_v37, %v1160_v36  ;;  %v1069_v49 = vor.u32 %v1449_v38, %v1066_v40 }
  0x30   :  { %673 = vmatpush.bf16.msra.mxu3 %v1089_v6  ;;  %v1496_v44 = vld [vmem:[#allocation8 + $0x178] sm:$0xf0]  ;;  %v1256_v47 = vld [vmem:[#allocation8 + $0x180] sm:$0xf]  ;;  %v1498_v48 = vld [vmem:[#allocation8 + $0x188] sm:$0xf0]  ;;  %v1345_v50 = vor.u32 %v1518_v41, %v1342_v42 }
  0x31   :  { %698 = vmatpush.bf16.msrb.mxu1 %v1293_v14  ;;  %686 = vmatpush.bf16.msrb.mxu0 %v1185_v15  ;;  %v1156_v51 = vld [vmem:[#allocation8 + $0xb0] sm:$0xf]  ;;  %v1472_v52 = vld [vmem:[#allocation8 + $0xb8] sm:$0xf0]  ;;  %v1253_v55 = vor.u32 %v1496_v44, %v1252_v43  ;;  %v1515_v56 = vld [vmem:[#allocation8 + $0x214] sm:$0xf]  ;;  %v1257_v61 = vor.u32 %v1498_v48, %v1256_v47 }
  0x32   :  { %v1488_v54 = vld [vmem:[#allocation8 + $0x13c] sm:$0xf]  ;;  %v1330_v57 = vld [vmem:[#allocation8 + $0x21c] sm:$0xf0]  ;;  %v1222_v58 = vld [vmem:[#allocation8 + $0x144] sm:$0xf0]  ;;  %v1157_v62 = vor.u32 %v1472_v52, %v1156_v51 }
  0x33   :  { %712 = vmatpush.bf16.msrb.mxu2 %v1093_v20  ;;  %v1240_v59 = vld [vmem:[#allocation8 + $0x158] sm:$0xf]  ;;  %v1493_v60 = vld [vmem:[#allocation8 + $0x160] sm:$0xf0]  ;;  %v1333_v63 = vor.u32 %v1515_v56, %v1330_v57  ;;  %v1225_v0 = vor.u32 %v1488_v54, %v1222_v58  ;;  %v1210_v3 = vld [vmem:[#allocation8 + $0x12c] sm:$0xf0] }
  0x34   :  { %674 = vmatpush.bf16.msra.mxu3 %v1077_v18  ;;  %v1241_v1 = vor.u32 %v1493_v60, %v1240_v59  ;;  %v1485_v2 = vld [vmem:[#allocation8 + $0x124] sm:$0xf]  ;;  %v1482_v5 = vld [vmem:[#allocation8 + $0x10c] sm:$0xf]  ;;  %v1198_v6 = vld [vmem:[#allocation8 + $0x114] sm:$0xf0] }
  0x35   :  { %699 = vmatpush.bf16.msrb.mxu1 %v1281_v28  ;;  %687 = vmatpush.bf16.msrb.mxu0 %v1173_v29  ;;  %v1213_v4 = vor.u32 %v1485_v2, %v1210_v3  ;;  %v1201_v7 = vor.u32 %v1482_v5, %v1198_v6  ;;  %v1479_v8 = vld [vmem:[#allocation8 + $0xf4] sm:$0xf]  ;;  %v1186_v9 = vld [vmem:[#allocation8 + $0xfc] sm:$0xf0]  ;;  %v1512_v11 = vld [vmem:[#allocation8 + $0x1fc] sm:$0xf] }
  0x36   :  { %v1189_v10 = vor.u32 %v1479_v8, %v1186_v9  ;;  %v1318_v12 = vld [vmem:[#allocation8 + $0x204] sm:$0xf0]  ;;  %v1228_v13 = vld [vmem:[#allocation8 + $0x140] sm:$0xf]  ;;  %v1490_v15 = vld [vmem:[#allocation8 + $0x148] sm:$0xf0] }
  0x37   :  { %713 = vmatpush.bf16.msrb.mxu2 %v1081_v35  ;;  %v1321_v14 = vor.u32 %v1512_v11, %v1318_v12  ;;  %v1229_v16 = vor.u32 %v1490_v15, %v1228_v13  ;;  %v1144_v17 = vld [vmem:[#allocation8 + $0x98] sm:$0xf]  ;;  %v1469_v18 = vld [vmem:[#allocation8 + $0xa0] sm:$0xf0]  ;;  %v1476_v20 = vld [vmem:[#allocation8 + $0xdc] sm:$0xf] }
  0x38   :  { %675 = vmatpush.bf16.msra.mxu3 %v1065_v32  ;;  %v1145_v19 = vor.u32 %v1469_v18, %v1144_v17  ;;  %v1174_v21 = vld [vmem:[#allocation8 + $0xe4] sm:$0xf0]  ;;  %v1509_v23 = vld [vmem:[#allocation8 + $0x1e4] sm:$0xf]  ;;  %v1306_v24 = vld [vmem:[#allocation8 + $0x1ec] sm:$0xf0] }
  0x39   :  { %700 = vmatpush.bf16.msrb.mxu1 %v1269_v45  ;;  %688 = vmatpush.bf16.msrb.mxu0 %v1161_v46  ;;  %v1177_v22 = vor.u32 %v1476_v20, %v1174_v21  ;;  %v1216_v25 = vld [vmem:[#allocation8 + $0x128] sm:$0xf]  ;;  %v1309_v26 = vor.u32 %v1509_v23, %v1306_v24  ;;  %v1487_v27 = vld [vmem:[#allocation8 + $0x130] sm:$0xf0]  ;;  %v1132_v29 = vld [vmem:[#allocation8 + $0x80] sm:$0xf] }
  0x3a   :  { %v1217_v28 = vor.u32 %v1487_v27, %v1216_v25  ;;  %v1466_v30 = vld [vmem:[#allocation8 + $0x88] sm:$0xf0]  ;;  %v1473_v32 = vld [vmem:[#allocation8 + $0xc4] sm:$0xf]  ;;  %v1162_v33 = vld [vmem:[#allocation8 + $0xcc] sm:$0xf0] }
  0x3b   :  { %714 = vmatpush.bf16.msrb.mxu2 %v1069_v49  ;;  %v1133_v31 = vor.u32 %v1466_v30, %v1132_v29  ;;  %v1165_v34 = vor.u32 %v1473_v32, %v1162_v33  ;;  %v1506_v35 = vld [vmem:[#allocation8 + $0x1cc] sm:$0xf]  ;;  %v1294_v36 = vld [vmem:[#allocation8 + $0x1d4] sm:$0xf0]  ;;  %v1204_v38 = vld [vmem:[#allocation8 + $0x110] sm:$0xf] }
  0x3c   :  { %720 = vmatpush.bf16.msrb.mxu3 %v1249_v39  ;;  %v1297_v37 = vor.u32 %v1506_v35, %v1294_v36  ;;  %v1484_v39 = vld [vmem:[#allocation8 + $0x118] sm:$0xf0]  ;;  %v1120_v41 = vld [vmem:[#allocation8 + $0x68] sm:$0xf]  ;;  %v1463_v42 = vld [vmem:[#allocation8 + $0x70] sm:$0xf0] }
  0x3d   :  { %733 = vmatpush.bf16.msra.mxu0 %v1345_v50  ;;  %701 = vmatpush.bf16.msrb.mxu1 %v1257_v61  ;;  %v1205_v40 = vor.u32 %v1484_v39, %v1204_v38  ;;  %v1121_v43 = vor.u32 %v1463_v42, %v1120_v41  ;;  %v1503_v44 = vld [vmem:[#allocation8 + $0x1b4] sm:$0xf]  ;;  %v1282_v45 = vld [vmem:[#allocation8 + $0x1bc] sm:$0xf0]  ;;  %v1192_v46 = vld [vmem:[#allocation8 + $0xf8] sm:$0xf] }
  0x3e   :  { %v1285_v47 = vor.u32 %v1503_v44, %v1282_v45  ;;  %v1481_v48 = vld [vmem:[#allocation8 + $0x100] sm:$0xf0]  ;;  %v1108_v50 = vld [vmem:[#allocation8 + $0x50] sm:$0xf]  ;;  %v1460_v51 = vld [vmem:[#allocation8 + $0x58] sm:$0xf0] }
  0x3f   :  { %759 = vmatpush.bf16.msra.mxu2 %v1253_v55  ;;  %v1193_v49 = vor.u32 %v1481_v48, %v1192_v46  ;;  %v1109_v52 = vor.u32 %v1460_v51, %v1108_v50  ;;  %v1270_v54 = vld [vmem:[#allocation8 + $0x1a4] sm:$0xf0]  ;;  %v1180_v55 = vld [vmem:[#allocation8 + $0xe0] sm:$0xf]  ;;  %v1478_v57 = vld [vmem:[#allocation8 + $0xe8] sm:$0xf0] }
  0x40   :  { %721 = vmatpush.bf16.msrb.mxu3 %v1237_v53  ;;  %v1500_v53 = vld [vmem:[#allocation8 + $0x19c] sm:$0xf]  ;;  %v1181_v58 = vor.u32 %v1478_v57, %v1180_v55  ;;  %v1096_v59 = vld [vmem:[#allocation8 + $0x38] sm:$0xf]  ;;  %v1457_v60 = vld [vmem:[#allocation8 + $0x40] sm:$0xf0] }
  0x41   :  { %746 = vmatpush.bf16.msra.mxu1 %v1157_v62  ;;  %734 = vmatpush.bf16.msra.mxu0 %v1333_v63  ;;  %v1273_v56 = vor.u32 %v1500_v53, %v1270_v54  ;;  %v1497_v61 = vld [vmem:[#allocation8 + $0x184] sm:$0xf]  ;;  %v1097_v62 = vor.u32 %v1457_v60, %v1096_v59  ;;  %v1258_v63 = vld [vmem:[#allocation8 + $0x18c] sm:$0xf0]  ;;  %v1454_v5 = vld [vmem:[#allocation8 + $0x28] sm:$0xf0] }
  0x42   :  { %v1261_v2 = vor.u32 %v1497_v61, %v1258_v63  ;;  %v1451_v8 = vld [vmem:[#allocation8 + $0x10] sm:$0xf0]  ;;  %v1520_v17 = vld [vmem:[#allocation8 + $0x238] sm:$0xf0]  ;;  %v1336_v24 = vld [vmem:[#allocation8 + $0x218] sm:$0xf] }
  0x43   :  { %760 = vmatpush.bf16.msra.mxu2 %v1241_v1  ;;  %v1475_v1 = vld [vmem:[#allocation8 + $0xd0] sm:$0xf0]  ;;  %v1517_v25 = vld [vmem:[#allocation8 + $0x220] sm:$0xf0]  ;;  %v1324_v33 = vld [vmem:[#allocation8 + $0x200] sm:$0xf] }
  0x44   :  { %722 = vmatpush.bf16.msrb.mxu3 %v1225_v0  ;;  %v1168_v0 = vld [vmem:[#allocation8 + $0xc8] sm:$0xf]  ;;  %v1527_v35 = vld [vmem:[#allocation10 + $0x30] sm:$0xff]  ;;  %v1508_v45 = vld [vmem:[#allocation8 + $0x1d8] sm:$0xf0]  ;;  %s1033_s29 = sshll.u32 %s1719_s28, 4  ;;  %s1034_s29 = int_to_ptr.vmem [resolvable:$true] %s1033_s29 }
  0x45   :  { %735 = vmatpush.bf16.msra.mxu0 %v1321_v14  ;;  %747 = vmatpush.bf16.msra.mxu1 %v1145_v19  ;;  %v1169_v3 = vor.u32 %v1475_v1, %v1168_v0  ;;  %v1312_v39 = vld [vmem:[#allocation8 + $0x1e8] sm:$0xf]  ;;  %v1300_v44 = vld [vmem:[#allocation8 + $0x1d0] sm:$0xf]  ;;  %v1525_v46 = vld [vmem:[#allocation10 + $0x20] sm:$0xff]  ;;  %s1035_s9 = sshll.u32 %s1794_s7, 4  ;;  %s1036_s9 = int_to_ptr.hbm [resolvable:$true] %s1035_s9 }
  0x46   :  { %v1526_v41 = vld [vmem:[#allocation10 + $0x28] sm:$0xff]  ;;  %v1288_v48 = vld [vmem:[#allocation8 + $0x1b8] sm:$0xf]  ;;  %v1276_v51 = vld [vmem:[#allocation8 + $0x1a0] sm:$0xf] }
  0x47   :  { %761 = vmatpush.bf16.msra.mxu2 %v1229_v16  ;;  %v1348_v16 = vld [vmem:[#allocation8 + $0x230] sm:$0xf]  ;;  %v1264_v54 = vld [vmem:[#allocation8 + $0x188] sm:$0xf]  ;;  %v1499_v55 = vld [vmem:[#allocation8 + $0x190] sm:$0xf0] }
  0x48   :  { %723 = vmatpush.bf16.msrb.mxu3 %v1213_v4  ;;  %v1084_v4 = vld [vmem:[#allocation8 + $0x20] sm:$0xf]  ;;  %v1536_v57 = vld [vmem:[#allocation10 + $0x78] sm:$0xff]  ;;  %v1535_v59 = vld [vmem:[#allocation10 + $0x70] sm:$0xff] }
  0x49   :  { %736 = vmatpush.bf16.msra.mxu0 %v1309_v26  ;;  %748 = vmatpush.bf16.msra.mxu1 %v1133_v31  ;;  %v1085_v6 = vor.u32 %v1454_v5, %v1084_v4  ;;  %v1337_v31 = vor.u32 %v1517_v25, %v1336_v24  ;;  %v1523_v60 = vld [vmem:[#allocation10 + $0x10] sm:$0xff]  ;;  %v1534_v61 = vld [vmem:[#allocation10 + $0x68] sm:$0xff]  ;;  %v1533_v63 = vld [vmem:[#allocation10 + $0x60] sm:$0xff] }
  0x4a   :  { %v1521_v0 = vld [vmem:[#allocation10] sm:$0xff]  ;;  %v1544_v1 = vld [vmem:[#allocation10 + $0xb8] sm:$0xff]  ;;  %v1531_v4 = vld [vmem:[#allocation10 + $0x50] sm:$0xff] }
  0x4b   :  { %762 = vmatpush.bf16.msra.mxu2 %v1217_v28  ;;  %v1528_v28 = vld [vmem:[#allocation10 + $0x38] sm:$0xff]  ;;  %v1542_v5 = vld [vmem:[#allocation10 + $0xa8] sm:$0xff] }
  0x4c   :  { %724 = vmatpush.bf16.msrb.mxu3 %v1201_v7  ;;  %v1072_v7 = vld [vmem:[#allocation8 + $0x8] sm:$0xf] }
  0x4d   :  { %737 = vmatpush.bf16.msra.mxu0 %v1297_v37  ;;  %749 = vmatpush.bf16.msra.mxu1 %v1121_v43  ;;  %v1073_v9 = vor.u32 %v1451_v8, %v1072_v7  ;;  %v1541_v7 = vld [vmem:[#allocation10 + $0xa0] sm:$0xff] }
  0x4e   :  { %v1529_v8 = vld [vmem:[#allocation10 + $0x40] sm:$0xff] }
  0x4f   :  { %763 = vmatpush.bf16.msra.mxu2 %v1205_v40  ;;  %v1511_v40 = vld [vmem:[#allocation8 + $0x1f0] sm:$0xf0] }
  0x50   :  { %725 = vmatpush.bf16.msrb.mxu3 %v1189_v10  ;;  %v107_v10 = vld [vmem:[#allocation7] sm:$0x7]  ;;  %v1313_v43 = vor.u32 %v1511_v40, %v1312_v39 }
  0x51   :  { %738 = vmatpush.bf16.msra.mxu0 %v1285_v47  ;;  %750 = vmatpush.bf16.msra.mxu1 %v1109_v52  ;;  %v109_v11 = vperm.slane %v107_v10, 0  ;;  %v110_v12 = vperm.slane %v107_v10, 1  ;;  %v111_v21 = vperm.slane %v107_v10, 2  ;;  %v1301_v47 = vor.u32 %v1508_v45, %v1300_v44  ;;  %v1502_v52 = vld [vmem:[#allocation8 + $0x1a8] sm:$0xf0]  ;;  %v1539_v10 = vld [vmem:[#allocation10 + $0x90] sm:$0xff] }
  0x52   :  { %v1277_v53 = vor.u32 %v1502_v52, %v1276_v51 }
  0x53   :  { %764 = vmatpush.bf16.msra.mxu2 %v1193_v49  ;;  %v1505_v49 = vld [vmem:[#allocation8 + $0x1c0] sm:$0xf0] }
  0x54   :  { %726 = vmatpush.bf16.msrb.mxu3 %v1177_v22  ;;  %v1349_v22 = vor.u32 %v1520_v17, %v1348_v16  ;;  %v1289_v50 = vor.u32 %v1505_v49, %v1288_v48 }
  0x55   :  { %739 = vmatpush.bf16.msra.mxu0 %v1273_v56  ;;  %751 = vmatpush.bf16.msra.mxu1 %v1097_v62  ;;  %v1265_v56 = vor.u32 %v1499_v55, %v1264_v54  ;;  %v1522_v62 = vld [vmem:[#allocation10 + $0x8] sm:$0xff]  ;;  %v1555_v54 = vld [vmem:[%s1793_s6] ss:$0 sm:$0xff] }
  0x57   :  { %765 = vmatpush.bf16.msra.mxu2 %v1181_v58  ;;  %v1524_v58 = vld [vmem:[#allocation10 + $0x18] sm:$0xff] }
  0x58   :  { %727 = vmatpush.bf16.msrb.mxu3 %v1165_v34  ;;  %v1514_v34 = vld [vmem:[#allocation8 + $0x208] sm:$0xf0] }
  0x59   :  { %740 = vmatpush.bf16.msra.mxu0 %v1261_v2  ;;  %752 = vmatpush.bf16.msra.mxu1 %v1085_v6  ;;  %v1325_v38 = vor.u32 %v1514_v34, %v1324_v33  ;;  %v1532_v2 = vld [vmem:[#allocation10 + $0x58] sm:$0xff]  ;;  %v1530_v6 = vld [vmem:[#allocation10 + $0x48] sm:$0xff] }
  0x5b   :  { %766 = vmatpush.bf16.msra.mxu2 %v1169_v3  ;;  %v1543_v3 = vld [vmem:[#allocation10 + $0xb0] sm:$0xff] }
  0x5d   :  { %753 = vmatpush.bf16.msra.mxu1 %v1073_v9  ;;  %v1540_v9 = vld [vmem:[#allocation10 + $0x98] sm:$0xff] }
  0x99   :  { %v144_v13 = vpop.f32.mrf.mxu0 }
  0x9a   :  { %v145_v14 = vadd.f32 %v144_v13, %v109_v11  ;;  %v157_v15 = vpop.f32.mrf.mxu1  ;;  %v276_v11 = vld [vmem:[%s1791_s4] sm:$0x7] }
  0x9b   :  { %v158_v18 = vadd.f32 %v157_v15, %v110_v12  ;;  %v278_v13 = vperm.slane %v276_v11, 0  ;;  %v280_v39 = vperm.slane %v276_v11, 2 }
  0x9c   :  { %v174_v19 = vmax.f32 %v145_v14, 0.0  ;;  %v1538_v14 = vld [vmem:[#allocation10 + $0x88] sm:$0xff] }
  0x9d   :  { %v175_v20 = vmax.f32 %v158_v18, 0.0 }
  0x9e   :  { %v177_v23 = vpack.c.bf16 %v174_v19, %v174_v19 }
  0x9f   :  { %v178_v26 = vpack.c.bf16 %v175_v20, %v175_v20 }
  0xa0   :  { %676 = vmatmul.bf16.vlgmr.msra.gmra.mxu3 %v177_v23  ;;  %715 = vmatmul.bf16.vlgmr.msrb.gmra.mxu2 %v177_v23 }
  0xa1   :  { %v170_v27 = vpop.f32.mrf.mxu2  ;;  %689 = vmatmul.bf16.vlgmr.msrb.gmra.mxu0 %v178_v26  ;;  %v146_v30 = vpop.f32.mrf.mxu0  ;;  %772 = vmatpush.bf16.msra.mxu3 %v1349_v22 }
  0xa2   :  { %v171_v29 = vadd.f32 %v170_v27, %v111_v21  ;;  %v159_v32 = vpop.f32.mrf.mxu1  ;;  %987 = vmatpush.bf16.msrb.mxu0 %v1528_v28  ;;  %1013 = vmatpush.bf16.msrb.mxu2 %v1544_v1  ;;  %v1537_v21 = vld [vmem:[#allocation10 + $0x80] sm:$0xff]  ;;  %v279_v28 = vperm.slane %v276_v11, 1 }
  0xa4   :  { %v176_v36 = vmax.f32 %v171_v29, 0.0 }
  0xa5   :  { %773 = vmatpush.bf16.msra.mxu3 %v1337_v31 }
  0xa6   :  { %v179_v37 = vpack.c.bf16 %v176_v36, %v176_v36  ;;  %988 = vmatpush.bf16.msrb.mxu0 %v1527_v35  ;;  %1014 = vmatpush.bf16.msrb.mxu2 %v1543_v3 }
  0xa8   :  { %702 = vmatmul.bf16.vlgmr.msrb.gmra.mxu1 %v179_v37 }
  0xa9   :  { %v172_v42 = vpop.f32.mrf.mxu2  ;;  %774 = vmatpush.bf16.msra.mxu3 %v1325_v38  ;;  %1000 = vmatpush.bf16.msrb.mxu1 %v1536_v57 }
  0xaa   :  { %989 = vmatpush.bf16.msrb.mxu0 %v1526_v41  ;;  %1015 = vmatpush.bf16.msrb.mxu2 %v1542_v5 }
  0xad   :  { %775 = vmatpush.bf16.msra.mxu3 %v1313_v43  ;;  %1001 = vmatpush.bf16.msrb.mxu1 %v1535_v59 }
  0xae   :  { %990 = vmatpush.bf16.msrb.mxu0 %v1525_v46  ;;  %1016 = vmatpush.bf16.msrb.mxu2 %v1541_v7 }
  0xb0   :  { %728 = vmatmul.bf16.vlgmr.msrb.gmra.mxu3 %v178_v26  ;;  %767 = vmatmul.bf16.vlgmr.msra.gmra.mxu2 %v178_v26 }
  0xb1   :  { %741 = vmatmul.bf16.vlgmr.msra.gmra.mxu0 %v179_v37  ;;  %776 = vmatpush.bf16.msra.mxu3 %v1301_v47 }
  0xb2   :  { %991 = vmatpush.bf16.msrb.mxu0 %v1524_v58  ;;  %1002 = vmatpush.bf16.msrb.mxu1 %v1534_v61 }
  0xb3   :  { %1017 = vmatpush.bf16.msrb.mxu2 %v1540_v9 }
  0xb5   :  { %777 = vmatpush.bf16.msra.mxu3 %v1289_v50 }
  0xb6   :  { %992 = vmatpush.bf16.msrb.mxu0 %v1523_v60  ;;  %1003 = vmatpush.bf16.msrb.mxu1 %v1533_v63 }
  0xb7   :  { %1018 = vmatpush.bf16.msrb.mxu2 %v1539_v10 }
  0xb8   :  { %754 = vmatmul.bf16.vlgmr.msra.gmra.mxu1 %v177_v23 }
  0xb9   :  { %778 = vmatpush.bf16.msra.mxu3 %v1277_v53 }
  0xba   :  { %993 = vmatpush.bf16.msrb.mxu0 %v1522_v62  ;;  %1004 = vmatpush.bf16.msrb.mxu1 %v1532_v2 }
  0xbb   :  { %1019 = vmatpush.bf16.msrb.mxu2 %v1538_v14 }
  0xbd   :  { %779 = vmatpush.bf16.msra.mxu3 %v1265_v56 }
  0xbe   :  { %994 = vmatpush.bf16.msrb.mxu0 %v1521_v0  ;;  %1005 = vmatpush.bf16.msrb.mxu1 %v1531_v4 }
  0xbf   :  { %1020 = vmatpush.bf16.msrb.mxu2 %v1537_v21 }
  0xc0   :  { %780 = vmatmul.bf16.vlgmr.msra.gmra.mxu3 %v179_v37 }
  0xc2   :  { %1006 = vmatpush.bf16.msrb.mxu1 %v1530_v6 }
  0xc6   :  { %1007 = vmatpush.bf16.msrb.mxu1 %v1529_v8 }
 0x11e   :  { %v690_v12 = vpop.f32.mrf.mxu0 }
 0x123   :  { %v677_v15 = vpop.f32.mrf.mxu3  ;;  %v716_v16 = vpop.f32.mrf.mxu2 }
 0x124   :  { %v678_v17 = vadd.f32 %v677_v15, %v278_v13  ;;  %v717_v30 = vadd.f32 %v716_v16, %v279_v28 }
 0x125   :  { %v703_v18 = vpop.f32.mrf.mxu1 }
 0x126   :  { %v691_v19 = vadd.f32 %v690_v12, %v678_v17  ;;  %v692_v20 = vpop.f32.mrf.mxu0 }
 0x128   :  { %v704_v22 = vadd.f32 %v703_v18, %v691_v19 }
 0x12a   :  { %v785_v23 = vmax.f32 %v704_v22, 0.0 }
 0x12b   :  { %v679_v24 = vpop.f32.mrf.mxu3  ;;  %v718_v25 = vpop.f32.mrf.mxu2 }
 0x12c   :  { %v788_v26 = vpack.c.bf16 %v785_v23, %v785_v23 }
 0x12d   :  { %v705_v27 = vpop.f32.mrf.mxu1 }
 0x12e   :  { %v742_v29 = vpop.f32.mrf.mxu0  ;;  %995 = vmatmul.bf16.vlgmr.msrb.gmra.mxu0 %v788_v26 }
 0x133   :  { %v729_v31 = vpop.f32.mrf.mxu3  ;;  %v768_v32 = vpop.f32.mrf.mxu2 }
 0x134   :  { %v730_v33 = vadd.f32 %v729_v31, %v717_v30 }
 0x135   :  { %v755_v34 = vpop.f32.mrf.mxu1 }
 0x136   :  { %v743_v35 = vadd.f32 %v742_v29, %v730_v33  ;;  %v744_v36 = vpop.f32.mrf.mxu0  ;;  %v756_v43 = vadd.f32 %v755_v34, %v280_v39 }
 0x138   :  { %v786_v37 = vmax.f32 %v743_v35, 0.0  ;;  %v769_v44 = vadd.f32 %v768_v32, %v756_v43 }
 0x13a   :  { %v789_v38 = vpack.c.bf16 %v786_v37, %v786_v37 }
 0x13b   :  { %v731_v40 = vpop.f32.mrf.mxu3  ;;  %v770_v41 = vpop.f32.mrf.mxu2 }
 0x13c   :  { %1008 = vmatmul.bf16.vlgmr.msrb.gmra.mxu1 %v789_v38 }
 0x13d   :  { %v757_v42 = vpop.f32.mrf.mxu1 }
 0x143   :  { %v781_v45 = vpop.f32.mrf.mxu3 }
 0x144   :  { %v782_v46 = vadd.f32 %v781_v45, %v769_v44 }
 0x146   :  { %v787_v47 = vmax.f32 %v782_v46, 0.0 }
 0x148   :  { %v790_v48 = vpack.c.bf16 %v787_v47, %v787_v47 }
 0x14a   :  { %1021 = vmatmul.bf16.vlgmr.msrb.gmra.mxu2 %v790_v48 }
 0x14b   :  { %v783_v49 = vpop.f32.mrf.mxu3 }
 0x1ab   :  { %v996_v50 = vpop.f32.mrf.mxu0 }
 0x1ac   :  { %v997_v55 = vadd.f32 %v1555_v54, %v996_v50 }
 0x1b3   :  { %v998_v51 = vpop.f32.mrf.mxu0 }
 0x1b9   :  { %v1009_v52 = vpop.f32.mrf.mxu1 }
 0x1ba   :  { %v1010_v56 = vadd.f32 %v1009_v52, %v997_v55 }
 0x1c1   :  { %v1011_v53 = vpop.f32.mrf.mxu1 }
 0x1cd   :  { %v1022_v57 = vpop.f32.mrf.mxu2 }
 0x1ce   :  { %v1023_v58 = vadd.f32 %v1022_v57, %v1010_v56 }
 0x1d0   :  { %1556 = vtanh.f32 %v1023_v58 }
 0x1d5   :  { %v1024_v59 = vpop.f32.mrf.mxu2 }
 0x1d6   :  { %v1557_v60 = vpop.eup %1556 }
 0x1d7   :  { %1027 = vst [vmem:[#allocation11] sm:$0xff] %v1557_v60 }
 0x1d8   :  { %1038 = dma.vmem_to_hbm [thread:$0]  %s1034_s29, 128, %s1036_s9, [#allocation4]  }
 0x1d9   :  { %1708 = dma.done.wait [#allocation4], 128  }
 0x1da   :  { %1709 = vsyncadd [#allocation4], 4294967168 }
 0x1db   :  { %1043 = vsyncpa [#allocation3], 1 }
 0x1dc   :  { %1044 = vsyncpa [#allocation6], 1 }
 0x1dd   :  { %1045 = vsyncpa [#allocation9], 1 }
 0x1de   :  { %1046 = vsyncpa [#allocation4], 1 }

</bundles_post_ra>
